<compile_context>
chip_gen: v6e
topology: v6e:2x2x1
jax: 0.10.0
libtpu: 0.0.40
codegen_flags: <defaults>
</compile_context>

<pallas_src>
import functools

import jax
import jax.numpy as jnp
from jax.experimental import pallas as pl
from jax.experimental.pallas import tpu as pltpu


def _round_up(x: int, m: int) -> int:
    return (x + m - 1) // m * m


def prepare_fc_final_weight(w):
    """One-time parameter re-layout (keep OUT of the per-call path).

    w: [C, D] float32 -- PyTorch nn.Linear weight layout (no bias).
    returns: [D, c_pad] float32, transposed and zero-padded so the class axis
             is lane-dense (multiple of 128) inside the kernel's VMEM.
    """
    C, D = w.shape
    c_pad = _round_up(C, 128)
    return jnp.pad(w.T, ((0, 0), (0, c_pad - C)))


def fc_softmax_kernel(x_ref, w_ref, o_ref, *, valid_classes: int):
    """One batch tile: logits = x @ W (MXU, f32 acc), softmax over classes.

    The class axis is padded to 128 lanes in VMEM only; padded columns are
    masked to -inf before max/exp/sum so the denominator is exact, and only
    the `valid_classes` real columns are written back to HBM.
    """
    logits = jnp.dot(x_ref[...], w_ref[...], preferred_element_type=jnp.float32)

    col = jax.lax.broadcasted_iota(jnp.int32, logits.shape, dimension=1)
    logits = jnp.where(col < valid_classes, logits, jnp.float32(-jnp.inf))

    m = jnp.max(logits, axis=1, keepdims=True)
    e = jnp.exp(logits - m)
    denom = jnp.sum(e, axis=1, keepdims=True)
    probs = e / denom                       # exact divide; kernel is DMA-bound

    # Store only the real class columns (lane-masked vst, tiny HBM writeback).
    o_ref[...] = probs[:, :valid_classes].astype(o_ref.dtype)


def fusion_net_forward(x, w_t, num_classes, *, block_b: int = 2048):
    """fusion_net.forward: softmax(x @ W^T, axis=1) with a bias-free Linear.

    x:   [B, D] float32, D = text_embed_size + 128
    w_t: [D, c_pad] float32, output of prepare_fc_final_weight (precomputed).
    returns: [B, num_classes] float32 probabilities.
    """
    B, D = x.shape
    D2, c_pad = w_t.shape
    assert D == D2
    assert 1 <= num_classes <= c_pad  # -inf masking needs >= 1 valid lane

    # v7x: prefer >= 2 tiles so the "parallel" axis can use both TensorCores.
    # (Single-core v5e/v6e: harmless.)  Tiles are multiples of 8 sublanes.
    half_b = _round_up(max(1, -(-B // 2)), 8)
    tile_b = max(8, min(block_b, half_b))
    n_tiles = pl.cdiv(B, tile_b)   # ragged last block: OK, softmax is row-wise

    out = pl.pallas_call(
        functools.partial(fc_softmax_kernel, valid_classes=num_classes),
        out_shape=jax.ShapeDtypeStruct((B, num_classes), jnp.float32),
        grid=(n_tiles,),
        in_specs=[
            # x: one batch tile per grid step (auto-pipelined DMA).
            pl.BlockSpec((tile_b, D), lambda i: (i, 0)),
            # W: constant index_map -> fetched once, stays resident in VMEM.
            pl.BlockSpec((D, c_pad), lambda i: (0, 0)),
        ],
        # Output writeback is only the real class columns (B, C).
        out_specs=pl.BlockSpec((tile_b, num_classes), lambda i: (i, 0)),
        compiler_params=pltpu.CompilerParams(
            dimension_semantics=("parallel",)),
    )(x, w_t)

    return out


if __name__ == "__main__":
    # Module hyperparameters consistent with forward()'s shape requirements.
    text_embed_size = 32
    num_classes = 4
    in_features = text_embed_size + 128  # fc_final input dim

    key = jax.random.PRNGKey(0)
    k_x, k_w, k_x2 = jax.random.split(key, 3)

    # PyTorch Linear weight layout: [out_features, in_features], no bias.
    bound = 1.0 / (in_features ** 0.5)
    w = jax.random.uniform(
        k_w, (num_classes, in_features), dtype=jnp.float32,
        minval=-bound, maxval=bound)

    # One-time parameter re-layout (hoisted out of the per-call path).
    w_t = jax.block_until_ready(prepare_fc_final_weight(w))

    # --- primary check: small batch ------------------------------------------
    batch = 2
    x = jax.random.normal(k_x, (batch, in_features), dtype=jnp.float32)
    out = jax.block_until_ready(fusion_net_forward(x, w_t, num_classes))
    ref = jax.nn.softmax(x @ w.T, axis=1)
    assert out.shape == (batch, num_classes)
    assert jnp.allclose(out, ref, atol=1e-4, rtol=1e-4)
    assert jnp.allclose(jnp.sum(out, axis=1), 1.0, atol=1e-4)

    # --- secondary check: multi-tile ragged batch grid ------------------------
    batch2 = 300
    x2 = jax.random.normal(k_x2, (batch2, in_features), dtype=jnp.float32)
    out2 = jax.block_until_ready(
        fusion_net_forward(x2, w_t, num_classes, block_b=128))
    ref2 = jax.nn.softmax(x2 @ w.T, axis=1)
    assert out2.shape == (batch2, num_classes)
    assert jnp.allclose(out2, ref2, atol=1e-4, rtol=1e-4)
    assert jnp.allclose(jnp.sum(out2, axis=1), 1.0, atol=1e-4)

    # TODO(synk): pretrained_feature (GRU + LayerNorm + fc_audio +
    # AdaptiveAvgPool1d) and attention_net_with_w are preprocessing helpers not
    # on forward()'s path; modal_attn is also unused by forward(). They are
    # intentionally not implemented here.

    print("KERNEL_OK")
</pallas_src>

<mosaic_0001>
module attributes {stable_mosaic.version = 11 : i64} {
  func.func @fc_softmax_kernel(%arg0: i32, %arg1: memref<8x160xf32, #tpu.memory_space<vmem>>, %arg2: memref<160x128xf32, #tpu.memory_space<vmem>>, %arg3: memref<8x4xf32, #tpu.memory_space<vmem>>) attributes {dimension_semantics = [#tpu.dimension_semantics<parallel>], iteration_bounds = array<i64: 1>, scalar_prefetch = 0 : i64, scratch_operands = 0 : i64, tpu.core_type = #tpu.core_type<tc>, window_params = [{transform_indices = @transform_0, window_bounds = array<i64: 8, 160>}, {pipeline_mode = #tpu.pipeline_mode<synchronous>, transform_indices = @transform_1, window_bounds = array<i64: 160, 128>}, {transform_indices = @transform_2, window_bounds = array<i64: 8, 4>}]} {
    %c0 = arith.constant 0 : index
    %c0_0 = arith.constant 0 : index
    %0 = vector.load %arg1[%c0, %c0_0] : memref<8x160xf32, #tpu.memory_space<vmem>>, vector<8x160xf32>
    %c0_1 = arith.constant 0 : index
    %c0_2 = arith.constant 0 : index
    %1 = vector.load %arg2[%c0_1, %c0_2] : memref<160x128xf32, #tpu.memory_space<vmem>>, vector<160x128xf32>
    %cst = arith.constant dense<0.000000e+00> : vector<8x128xf32>
    %2 = tpu.matmul %0, %1, %cst {dimension_numbers = #tpu.dot_dimension_numbers<[1], [0], [0], [1], [0, 0, 1, 1], [], []>} : vector<8x160xf32>, vector<160x128xf32>, vector<8x128xf32> -> vector<8x128xf32>
    %3 = tpu.iota {dimensions = array<i32: 1>} : vector<8x128xi32>
    %c4_i32 = arith.constant 4 : i32
    %4 = vector.broadcast %c4_i32 : i32 to vector<8x128xi32>
    %5 = arith.cmpi slt, %3, %4 : vector<8x128xi32>
    %cst_3 = arith.constant 0xFF800000 : f32
    %6 = vector.broadcast %cst_3 : f32 to vector<8x128xf32>
    %7 = arith.select %5, %2, %6 : vector<8x128xi1>, vector<8x128xf32>
    %cst_4 = arith.constant dense<0xFF800000> : vector<8xf32>
    %8 = vector.multi_reduction <maximumf>, %7, %cst_4 [1] : vector<8x128xf32> to vector<8xf32>
    %9 = vector.shape_cast %8 : vector<8xf32> to vector<8x1xf32>
    %10 = vector.broadcast %9 : vector<8x1xf32> to vector<8x128xf32>
    %11 = arith.subf %7, %10 : vector<8x128xf32>
    %12 = math.exp %11 : vector<8x128xf32>
    %cst_5 = arith.constant dense<0.000000e+00> : vector<8xf32>
    %13 = vector.multi_reduction <add>, %12, %cst_5 [1] : vector<8x128xf32> to vector<8xf32>
    %14 = vector.shape_cast %13 : vector<8xf32> to vector<8x1xf32>
    %15 = vector.broadcast %14 : vector<8x1xf32> to vector<8x128xf32>
    %16 = arith.divf %12, %15 : vector<8x128xf32>
    %17 = vector.extract_strided_slice %16 {offsets = [0, 0], sizes = [8, 4], strides = [1, 1]} : vector<8x128xf32> to vector<8x4xf32>
    %c0_6 = arith.constant 0 : index
    %c0_7 = arith.constant 0 : index
    %18 = vector.load %arg3[%c0_6, %c0_7] : memref<8x4xf32, #tpu.memory_space<vmem>>, vector<8x4xf32>
    tpu.vector_store %arg3[%c0_6, %c0_7], %17 {strides = array<i32>} : memref<8x4xf32, #tpu.memory_space<vmem>>, vector<8x4xf32>,
    return
  }
  func.func @transform_0(%arg0: i32) -> (i32, i32) {
    %c0_i32 = arith.constant 0 : i32
    %c0_i32_0 = arith.constant 0 : i32
    return %arg0, %c0_i32 : i32, i32
  }
  func.func @transform_1(%arg0: i32) -> (i32, i32) {
    %c0_i32 = arith.constant 0 : i32
    %c0_i32_0 = arith.constant 0 : i32
    %c0_i32_1 = arith.constant 0 : i32
    return %c0_i32, %c0_i32_0 : i32, i32
  }
  func.func @transform_2(%arg0: i32) -> (i32, i32) {
    %c0_i32 = arith.constant 0 : i32
    %c0_i32_0 = arith.constant 0 : i32
    return %arg0, %c0_i32 : i32, i32
  }
}

</mosaic_0001>

<bundles_post_ra>
// kernel: tpu_custom_call.1
= control target key start
LH: loop header
LB: loop body
LE: loop exit
PB: predicated region body
PF: predicated region fallthrough
CT: control target
= control target key end

     0   :  { %7 = vsyncpa [#allocation3], 0  ;;  %s334_s0 = inlined_call_operand.hbm [shape: f32[2,160], index: 0, kind: input, shape index: {}]   ;;  %s335_s1 = inlined_call_operand.hbm [shape: f32[160,128], index: 1, kind: input, shape index: {}]   ;;  %s336_s2 = inlined_call_operand.hbm [shape: f32[2,4], index: 2, kind: output, shape index: {}]  }
   0x1   :  { %8 = vsyncpa [#allocation6], 0 }
   0x2   :  { %9 = vsyncpa [#allocation4], 0 }
   0x3   :  { %14 = vsyncadd [#allocation3], 192  ;;  %s279_s9 = smov [#allocation2]  }
   0x4   :  { %s15_s10 = sshll.u32 %s279_s9, 4  ;;  %s16_s10 = int_to_ptr.vmem [resolvable:$true] %s15_s10 }
   0x5   :  { %s221_s11 = scalar_lea.vmem %s16_s10, 64  ;;  %s225_s12 = scalar_lea.vmem %s16_s10, 256 }
   0x6   :  { %p222_p0 = scmp.ne.s32.totalorder %s16_s10, %s221_s11  ;;  %p226_p1 = scmp.lt.s32.totalorder %s16_s10, %s16_s10 }
   0x7   :  { %p227_p2 = scmp.lt.s32.totalorder %s225_s12, %s221_s11 }
   0x9   :  { %p228_p3 = por %p227_p2, %p226_p1 }
   0xb   :  { %p229_p4 = pnand %p228_p3, %p222_p0 }
   0xd   :  { %232 = shalt.err (!%p229_p4)
}
   0xe   :  { %s280_s13 = smov 64   ;;  %s281_s14 = smov 4  }
   0xf   :  { %21 = dma.hbm_to_vmem [thread:$0]  %s334_s0, 64, %s16_s10, [#allocation3], %s280_s13, %s280_s13, %s281_s14  }
  0x10   :  { %s282_s17 = smov [#allocation5]  }
  0x11   :  { %s27_s18 = sshll.u32 %s282_s17, 4  ;;  %s28_s18 = int_to_ptr.vmem [resolvable:$true] %s27_s18 }
  0x12   :  { %s241_s19 = scalar_lea.vmem %s28_s18, 2560  ;;  %p246_p6 = scmp.lt.s32.totalorder %s28_s18, %s28_s18 }
  0x13   :  { %p242_p5 = scmp.ne.s32.totalorder %s28_s18, %s241_s19  ;;  %p247_p7 = scmp.lt.s32.totalorder %s241_s19, %s241_s19 }
  0x15   :  { %p248_p8 = por %p247_p7, %p246_p6 }
  0x17   :  { %p249_p9 = pnand %p248_p8, %p242_p5 }
  0x19   :  { %252 = shalt.err (!%p249_p9)
}
  0x1a   :  { %s283_s20 = smov 128   ;;  %s284_s21 = smov 8  }
  0x1b   :  { %33 = dma.hbm_to_vmem [thread:$0]  %s335_s1, 2560, %s28_s18, [#allocation6], %s283_s20, %s283_s20, %s284_s21  }
  0x1c   :  { %273 = dma.done.wait [#allocation3], 256  }
  0x1d   :  { %274 = vsyncadd [#allocation3], 4294967040 }
  0x1e   :  { %275 = dma.done.wait [#allocation6], 2560  }
  0x1f   :  { %276 = vsyncadd [#allocation6], 4294964736  ;;  %v285_v0 = vmov 0.0   ;;  %v73_v1 = vlaneseq  ;;  %v59_v2 = vld [vmem:[#allocation5 + $0x78] sm:$0xff]  ;;  %v58_v3 = vld [vmem:[#allocation5 + $0x70] sm:$0xff]  ;;  %vm87_vm0 = vcmask 261120  }
  0x20   :  { %90 = vmatprep.subr.mxu0 %v285_v0  ;;  %v57_v4 = vld [vmem:[#allocation5 + $0x68] sm:$0xff]  ;;  %v56_v5 = vld [vmem:[#allocation5 + $0x60] sm:$0xff]  ;;  %v55_v6 = vld [vmem:[#allocation5 + $0x58] sm:$0xff]  ;;  %vm173_vm2 = vcmask 31744  }
  0x21   :  { %91 = vmatpush1.msra.mxu0 %v59_v2  ;;  %v54_v7 = vld [vmem:[#allocation5 + $0x50] sm:$0xff]  ;;  %v212_v9 = vld.sshfl [vmem:[#allocation2 + $0x8] sm:$0xff pattern:$0x76325410]  ;;  %v53_v10 = vld [vmem:[#allocation5 + $0x48] sm:$0xff]  ;;  %v161_v26 = vand.u32 127, %v73_v1 }
  0x22   :  { %92 = vmatprep.subr.mxu0 %v285_v0  ;;  %v211_v8 = vld.sshfl [vmem:[#allocation2] sm:$0xff pattern:$0x76325410]  ;;  %v52_v11 = vld [vmem:[#allocation5 + $0x40] sm:$0xff]  ;;  %v51_v13 = vld [vmem:[#allocation5 + $0x38] sm:$0xff] }
  0x23   :  { %93 = vmatpush1.msra.mxu0 %v58_v3  ;;  %v85_v12 = vcombine.high %v211_v8, %v212_v9  ;;  %v50_v14 = vld [vmem:[#allocation5 + $0x30] sm:$0xff]  ;;  %v49_v15 = vld [vmem:[#allocation5 + $0x28] sm:$0xff]  ;;  %v48_v16 = vld [vmem:[#allocation5 + $0x20] sm:$0xff]  ;;  %v84_v25 = vcombine.low %v211_v8, %v212_v9  ;;  %vm162_vm1 = vcmp.lt.s32.totalorder %v161_v26, 4 }
  0x24   :  { %94 = vmatprep.subr.mxu0 %v285_v0  ;;  %v47_v17 = vld [vmem:[#allocation5 + $0x18] sm:$0xff]  ;;  %v46_v18 = vld [vmem:[#allocation5 + $0x10] sm:$0xff]  ;;  %v45_v19 = vld [vmem:[#allocation5 + $0x8] sm:$0xff] }
  0x25   :  { %95 = vmatpush1.msra.mxu0 %v57_v4  ;;  %193 = vmatprep.mubr.msk.f32.mxu0 %vm87_vm0, %v85_v12  ;;  %v44_v20 = vld [vmem:[#allocation5] sm:$0xff]  ;;  %v63_v21 = vld [vmem:[#allocation5 + $0x98] sm:$0xff]  ;;  %v62_v22 = vld [vmem:[#allocation5 + $0x90] sm:$0xff] }
  0x26   :  { %96 = vmatprep.subr.mxu0 %v285_v0  ;;  %v61_v23 = vld [vmem:[#allocation5 + $0x88] sm:$0xff]  ;;  %v60_v24 = vld [vmem:[#allocation5 + $0x80] sm:$0xff] }
  0x27   :  { %97 = vmatpush1.msra.mxu0 %v56_v5 }
  0x28   :  { %98 = vmatprep.subr.mxu0 %v285_v0 }
  0x29   :  { %99 = vmatpush1.msra.mxu0 %v55_v6 }
  0x2a   :  { %100 = vmatprep.subr.mxu0 %v285_v0 }
  0x2b   :  { %101 = vmatpush1.msra.mxu0 %v54_v7 }
  0x2c   :  { %102 = vmatprep.subr.mxu0 %v285_v0 }
  0x2d   :  { %103 = vmatpush1.msra.mxu0 %v53_v10 }
  0x2e   :  { %104 = vmatprep.subr.mxu0 %v285_v0 }
  0x2f   :  { %105 = vmatpush1.msra.mxu0 %v52_v11 }
  0x30   :  { %106 = vmatprep.subr.mxu0 %v285_v0 }
  0x31   :  { %107 = vmatpush1.msra.mxu0 %v51_v13 }
  0x32   :  { %108 = vmatprep.subr.mxu0 %v285_v0 }
  0x33   :  { %109 = vmatpush1.msra.mxu0 %v50_v14 }
  0x34   :  { %110 = vmatprep.subr.mxu0 %v285_v0 }
  0x35   :  { %111 = vmatpush1.msra.mxu0 %v49_v15 }
  0x36   :  { %112 = vmatprep.subr.mxu0 %v285_v0 }
  0x37   :  { %113 = vmatpush1.msra.mxu0 %v48_v16 }
  0x38   :  { %114 = vmatprep.subr.mxu0 %v285_v0 }
  0x39   :  { %115 = vmatpush1.msra.mxu0 %v47_v17 }
  0x3a   :  { %116 = vmatprep.subr.mxu0 %v285_v0 }
  0x3b   :  { %117 = vmatpush1.msra.mxu0 %v46_v18 }
  0x3c   :  { %118 = vmatprep.subr.mxu0 %v285_v0 }
  0x3d   :  { %119 = vmatpush1.msra.mxu0 %v45_v19 }
  0x3e   :  { %120 = vmatprep.subr.mxu0 %v285_v0 }
  0x3f   :  { %121 = vmatpush1.msra.mxu0 %v44_v20 }
  0x40   :  { %146 = vmatprep.subr.mxu0 %v285_v0 }
  0x41   :  { %147 = vmatpush2.msra.mxu0 %v63_v21 }
  0x42   :  { %148 = vmatprep.subr.mxu0 %v285_v0 }
  0x43   :  { %149 = vmatpush2.msra.mxu0 %v62_v22 }
  0x44   :  { %150 = vmatprep.subr.mxu0 %v285_v0 }
  0x45   :  { %151 = vmatpush2.msra.mxu0 %v61_v23 }
  0x46   :  { %152 = vmatprep.subr.mxu0 %v285_v0 }
  0x47   :  { %153 = vmatpush2.msra.mxu0 %v60_v24 }
  0x48   :  { %155 = vmatmul.mubr.f32.vlgmr.msra.gmra.mxu0 %v84_v25 }
 0x108   :  { %v156_v27 = vpop.f32.mrf.mxu0 }
 0x109   :  { %v163_v28 = vsel %vm162_vm1, %v156_v27, -inf }
 0x10a   :  { %164 = vmax.xlane.f32.xlu0 %v163_v28  ;;  %v158_v29 = vpop.f32.mrf.mxu0 }
 0x193   :  { %v165_v30 = vpop.xlane.xlu0 %164 }
 0x194   :  { %v166_v31 = vsub.f32 %v163_v28, %v165_v30 }
 0x196   :  { %v167_v32 = vmul.f32 1.442695, %v166_v31 }
 0x198   :  { %207 = vpow2.f32 %v167_v32 }
 0x1a5   :  { %v208_v33 = vpop.eup %207 }
 0x1a6   :  { %169 = vadd.xlane.f32.xlu0 %v208_v33 }
 0x22f   :  { %v170_v34 = vpop.xlane.xlu0 %169 }
 0x230   :  { %209 = vrcp.f32 %v170_v34 }
 0x23d   :  { %v210_v35 = vpop.eup %209 }
 0x23e   :  { %v172_v36 = vmul.f32 %v210_v35, %v208_v33 }
 0x240   :  { %174 = vst.msk [vmem:[#allocation7] sm:$0xff] %vm173_vm2, %v172_v36 }
 0x241   :  { %179 = vsyncadd [#allocation4], 96  ;;  %s286_s0 = smov [#allocation7]  }
 0x242   :  { %s180_s1 = sshll.u32 %s286_s0, 4  ;;  %s181_s1 = int_to_ptr.vmem [resolvable:$true] %s180_s1 }
 0x243   :  { %s253_s24 = scalar_lea.vmem %s181_s1, 32  ;;  %s257_s25 = scalar_lea.vmem %s181_s1, 128 }
 0x244   :  { %p254_p10 = scmp.ne.s32.totalorder %s181_s1, %s253_s24  ;;  %p258_p11 = scmp.lt.s32.totalorder %s181_s1, %s181_s1 }
 0x245   :  { %p259_p12 = scmp.lt.s32.totalorder %s257_s25, %s253_s24 }
 0x247   :  { %p260_p13 = por %p259_p12, %p258_p11 }
 0x249   :  { %p261_p0 = pnand %p260_p13, %p254_p10 }
 0x24b   :  { %264 = shalt.err (!%p261_p0)
}
 0x24c   :  { %s287_s26 = smov 32   ;;  %s288_s27 = smov 2  }
 0x24d   :  { %186 = dma.vmem_to_hbm [thread:$0]  %s181_s1, 32, %s336_s2, [#allocation4], %s287_s26, %s287_s26, %s288_s27  }
 0x24e   :  { %277 = dma.done.wait [#allocation4], 128  }
 0x24f   :  { %278 = vsyncadd [#allocation4], 4294967168 }
 0x250   :  { %190 = vsyncpa [#allocation3], 1 }
 0x251   :  { %191 = vsyncpa [#allocation6], 1 }
 0x252   :  { %192 = vsyncpa [#allocation4], 1 }

</bundles_post_ra>
